<compile_context>
chip_gen: v5e
topology: v5e:2x2
jax: 0.10.0
libtpu: 0.0.40
codegen_flags: <defaults>
</compile_context>

<pallas_src>
from functools import partial

import jax
import jax.numpy as jnp
from jax.experimental import pallas as pl
from jax.experimental.pallas import tpu as pltpu

DILATIONS = (1, 2, 4, 8)
KSIZE = 3
BN_EPS = 1e-5


def _multiscale_fused_kernel(x_ref, w_ref, b_ref, o_ref, *, L, nb):
    """x_ref: (nb, C_in, L)  w_ref: (C_out, 12*C_in)  b_ref: (C_out, 1)
    o_ref: (nb, C_out, L)."""
    c_in = x_ref.shape[1]
    xb = x_ref[...]
    # Lane-concatenate the nb batch rows -> (C_in, nb*L): one wide matmul per block.
    x_cat = xb[0] if nb == 1 else jnp.concatenate(
        [xb[i] for i in range(nb)], axis=-1)
    nbl = nb * L

    # Lane position within each length-L batch segment (for zero "same" padding
    # and to stop shifts leaking across batch boundaries).
    p = jax.lax.broadcasted_iota(jnp.int32, (c_in, nbl), 1) % L

    # 9 unique shifted copies of x (offsets {-8,-4,-2,-1,0,1,2,4,8}), built once.
    shifted = {}
    for d in DILATIONS:
        for k in range(KSIZE):
            off = (k - 1) * d          # output[l] needs x[l + off]
            if off in shifted:
                continue
            if off == 0:
                shifted[off] = x_cat
                continue
            rolled = jnp.roll(x_cat, -off, axis=-1)
            valid = (p < L - off) if off > 0 else (p >= -off)
            shifted[off] = jnp.where(valid, rolled, 0.0)

    # im2col RHS; rows ordered (branch, tap, in_channel) to match W_fused columns.
    col = jnp.concatenate(
        [shifted[(k - 1) * d] for d in DILATIONS for k in range(KSIZE)], axis=0)

    # Single fused matmul + bias + ReLU (f32 accumulation / epilogue).
    y = jnp.dot(w_ref[...], col, preferred_element_type=jnp.float32)
    y = jnp.maximum(y + b_ref[...], 0.0)

    for i in range(nb):
        o_ref[i, :, :] = y[:, i * L:(i + 1) * L].astype(o_ref.dtype)


def _fold_params(params, c_in, c_out):
    """Fold branch convs, 1x1 combine conv and eval-mode BN into (W_fused, b_fused)."""
    oc4 = c_out // 4
    # (oc4, C_in, 3) -> (oc4, 3*C_in) with column order (tap, in_channel).
    blocks = [
        jnp.transpose(params["branch_w"][i], (0, 2, 1)).reshape(oc4, KSIZE * c_in)
        for i in range(4)
    ]
    bdiag = jax.scipy.linalg.block_diag(*blocks)            # (C_out, 12*C_in)
    b_cat = params["branch_b"].reshape(c_out)

    scale = params["bn_gamma"] / jnp.sqrt(params["bn_var"] + BN_EPS)
    shift = params["bn_beta"] - params["bn_mean"] * scale

    w_fused = scale[:, None] * (params["combine_w"] @ bdiag)             # (C_out, 12*C_in)
    b_fused = scale * (params["combine_w"] @ b_cat + params["combine_b"]) + shift
    return (w_fused.astype(jnp.float32),
            b_fused.reshape(c_out, 1).astype(jnp.float32))


def _pick_nb(n, L, max_lanes=2048):
    """Largest batch block whose lane width stays modest, keeping >=2 grid steps
    (so v7x's two TensorCores both get work) when possible."""
    divs = [d for d in range(1, n + 1) if n % d == 0]
    cands = [d for d in divs if d * L <= max_lanes and n // d >= 2]
    if not cands:
        cands = [d for d in divs if d * L <= max_lanes] or [1]
    return max(cands)


def multiscale_forward(x, params, *, nb=None, compute_dtype=jnp.float32):
    n, c_in, L = x.shape
    c_out = params["combine_w"].shape[0]
    assert c_out % 4 == 0, "out_channels must be divisible by 4"
    nb = _pick_nb(n, L) if nb is None else nb
    assert n % nb == 0

    w_fused, b_fused = _fold_params(params, c_in, c_out)
    # Optionally ship activations/weights in bf16 (v6e/v7x); epilogue stays f32.
    w_fused = w_fused.astype(compute_dtype)
    x_in = x.astype(compute_dtype)
    kcol = 4 * KSIZE * c_in

    kernel = partial(_multiscale_fused_kernel, L=L, nb=nb)
    return pl.pallas_call(
        kernel,
        out_shape=jax.ShapeDtypeStruct((n, c_out, L), jnp.float32),
        grid=(n // nb,),
        in_specs=[
            pl.BlockSpec((nb, c_in, L), lambda b: (b, 0, 0)),
            pl.BlockSpec((c_out, kcol), lambda b: (0, 0)),
            pl.BlockSpec((c_out, 1), lambda b: (0, 0)),
        ],
        out_specs=pl.BlockSpec((nb, c_out, L), lambda b: (b, 0, 0)),
        compiler_params=pltpu.CompilerParams(
            dimension_semantics=("parallel",)),
    )(x_in, w_fused, b_fused)


def reference_forward(x, params):
    """Pure-JAX reference matching the PyTorch module (eval-mode BN)."""
    outs = []
    for i, d in enumerate(DILATIONS):
        w = params["branch_w"][i]                  # (oc4, C_in, 3)
        b = params["branch_b"][i]                  # (oc4,)
        y = jax.lax.conv_general_dilated(
            x, w, window_strides=(1,), padding=[(d, d)], rhs_dilation=(d,),
            dimension_numbers=("NCH", "OIH", "NCH"))
        outs.append(y + b[None, :, None])
    cat = jnp.concatenate(outs, axis=1)            # (N, C_out, L)
    y = (jnp.einsum("oc,ncl->nol", params["combine_w"], cat)
         + params["combine_b"][None, :, None])
    scale = params["bn_gamma"] / jnp.sqrt(params["bn_var"] + BN_EPS)
    shift = params["bn_beta"] - params["bn_mean"] * scale
    y = y * scale[None, :, None] + shift[None, :, None]
    return jnp.maximum(y, 0.0)


def init_params(key, in_channels, out_channels):
    oc4 = out_channels // 4
    ks = jax.random.split(key, 8)
    return {
        "branch_w": 0.2 * jax.random.normal(
            ks[0], (4, oc4, in_channels, KSIZE), jnp.float32),
        "branch_b": 0.1 * jax.random.normal(ks[1], (4, oc4), jnp.float32),
        "combine_w": 0.2 * jax.random.normal(
            ks[2], (out_channels, out_channels), jnp.float32),
        "combine_b": 0.1 * jax.random.normal(ks[3], (out_channels,), jnp.float32),
        "bn_gamma": 0.5 + jax.random.uniform(ks[4], (out_channels,), jnp.float32),
        "bn_beta": 0.1 * jax.random.normal(ks[5], (out_channels,), jnp.float32),
        "bn_mean": 0.1 * jax.random.normal(ks[6], (out_channels,), jnp.float32),
        "bn_var": 0.5 + jax.random.uniform(ks[7], (out_channels,), jnp.float32),
    }


if __name__ == "__main__":
    N, C_IN, C_OUT, L = 2, 4, 16, 128
    key = jax.random.PRNGKey(0)
    kx, kp = jax.random.split(key)
    x = jax.random.normal(kx, (N, C_IN, L), jnp.float32)
    params = init_params(kp, C_IN, C_OUT)

    out = jax.block_until_ready(multiscale_forward(x, params))
    ref = jax.block_until_ready(reference_forward(x, params))

    assert out.shape == (N, C_OUT, L)
    assert jnp.allclose(out, ref, atol=1e-4, rtol=1e-4), \
        f"max abs err {jnp.max(jnp.abs(out - ref))}"
    print("KERNEL_OK")
</pallas_src>

<mosaic_0001>
module attributes {stable_mosaic.version = 11 : i64} {
  func.func @_multiscale_fused_kernel(%arg0: i32, %arg1: memref<1x4x128xf32, #tpu.memory_space<vmem>>, %arg2: memref<16x48xf32, #tpu.memory_space<vmem>>, %arg3: memref<16x1xf32, #tpu.memory_space<vmem>>, %arg4: memref<1x16x128xf32, #tpu.memory_space<vmem>>) attributes {dimension_semantics = [#tpu.dimension_semantics<parallel>], iteration_bounds = array<i64: 2>, scalar_prefetch = 0 : i64, scratch_operands = 0 : i64, tpu.core_type = #tpu.core_type<tc>, window_params = [{transform_indices = @transform_0, window_bounds = array<i64: 1, 4, 128>}, {pipeline_mode = #tpu.pipeline_mode<synchronous>, transform_indices = @transform_1, window_bounds = array<i64: 16, 48>}, {pipeline_mode = #tpu.pipeline_mode<synchronous>, transform_indices = @transform_2, window_bounds = array<i64: 16, 1>}, {transform_indices = @transform_3, window_bounds = array<i64: 1, 16, 128>}]} {
    %c0 = arith.constant 0 : index
    %c0_0 = arith.constant 0 : index
    %c0_1 = arith.constant 0 : index
    %0 = vector.load %arg1[%c0, %c0_0, %c0_1] : memref<1x4x128xf32, #tpu.memory_space<vmem>>, vector<1x4x128xf32>
    %1 = vector.shape_cast %0 : vector<1x4x128xf32> to vector<4x128xf32>
    %2 = tpu.iota {dimensions = array<i32: 1>} : vector<4x128xi32>
    %c128_i32 = arith.constant 128 : i32
    %c0_i32 = arith.constant 0 : i32
    %3 = arith.cmpi eq, %c128_i32, %c0_i32 : i32
    %c1_i32 = arith.constant 1 : i32
    %4 = arith.select %3, %c1_i32, %c128_i32 : i32
    %5 = vector.broadcast %4 : i32 to vector<4x128xi32>
    %6 = arith.remsi %2, %5 : vector<4x128xi32>
    %c0_i32_2 = arith.constant 0 : i32
    %7 = vector.broadcast %c0_i32_2 : i32 to vector<4x128xi32>
    %8 = arith.cmpi ne, %6, %7 : vector<4x128xi32>
    %c0_i32_3 = arith.constant 0 : i32
    %9 = vector.broadcast %c0_i32_3 : i32 to vector<4x128xi32>
    %10 = arith.cmpi slt, %6, %9 : vector<4x128xi32>
    %c0_i32_4 = arith.constant 0 : i32
    %11 = arith.cmpi slt, %4, %c0_i32_4 : i32
    %12 = vector.broadcast %11 : i1 to vector<4x128xi1>
    %13 = vector.broadcast %12 : vector<4x128xi1> to vector<4x128xi1>
    %14 = arith.xori %10, %13 : vector<4x128xi1>
    %15 = arith.andi %14, %8 : vector<4x128xi1>
    %16 = vector.broadcast %4 : i32 to vector<4x128xi32>
    %17 = arith.addi %6, %16 : vector<4x128xi32>
    %18 = arith.select %15, %17, %6 : vector<4x128xi1>, vector<4x128xi32>
    %19 = vector.extract_strided_slice %1 {offsets = [0, 127], sizes = [4, 1], strides = [1, 1]} : vector<4x128xf32> to vector<4x1xf32>
    %20 = vector.extract_strided_slice %1 {offsets = [0, 0], sizes = [4, 127], strides = [1, 1]} : vector<4x128xf32> to vector<4x127xf32>
    %21 = tpu.concatenate %19, %20 in 1 : vector<4x1xf32>, vector<4x127xf32> -> vector<4x128xf32>
    %c1_i32_5 = arith.constant 1 : i32
    %22 = vector.broadcast %c1_i32_5 : i32 to vector<4x128xi32>
    %23 = arith.cmpi sge, %18, %22 : vector<4x128xi32>
    %cst = arith.constant 0.000000e+00 : f32
    %24 = vector.broadcast %cst : f32 to vector<4x128xf32>
    %25 = arith.select %23, %21, %24 : vector<4x128xi1>, vector<4x128xf32>
    %26 = vector.extract_strided_slice %1 {offsets = [0, 1], sizes = [4, 127], strides = [1, 1]} : vector<4x128xf32> to vector<4x127xf32>
    %27 = vector.extract_strided_slice %1 {offsets = [0, 0], sizes = [4, 1], strides = [1, 1]} : vector<4x128xf32> to vector<4x1xf32>
    %28 = tpu.concatenate %26, %27 in 1 : vector<4x127xf32>, vector<4x1xf32> -> vector<4x128xf32>
    %c127_i32 = arith.constant 127 : i32
    %29 = vector.broadcast %c127_i32 : i32 to vector<4x128xi32>
    %30 = arith.cmpi slt, %18, %29 : vector<4x128xi32>
    %cst_6 = arith.constant 0.000000e+00 : f32
    %31 = vector.broadcast %cst_6 : f32 to vector<4x128xf32>
    %32 = arith.select %30, %28, %31 : vector<4x128xi1>, vector<4x128xf32>
    %33 = vector.extract_strided_slice %1 {offsets = [0, 126], sizes = [4, 2], strides = [1, 1]} : vector<4x128xf32> to vector<4x2xf32>
    %34 = vector.extract_strided_slice %1 {offsets = [0, 0], sizes = [4, 126], strides = [1, 1]} : vector<4x128xf32> to vector<4x126xf32>
    %35 = tpu.concatenate %33, %34 in 1 : vector<4x2xf32>, vector<4x126xf32> -> vector<4x128xf32>
    %c2_i32 = arith.constant 2 : i32
    %36 = vector.broadcast %c2_i32 : i32 to vector<4x128xi32>
    %37 = arith.cmpi sge, %18, %36 : vector<4x128xi32>
    %cst_7 = arith.constant 0.000000e+00 : f32
    %38 = vector.broadcast %cst_7 : f32 to vector<4x128xf32>
    %39 = arith.select %37, %35, %38 : vector<4x128xi1>, vector<4x128xf32>
    %40 = vector.extract_strided_slice %1 {offsets = [0, 2], sizes = [4, 126], strides = [1, 1]} : vector<4x128xf32> to vector<4x126xf32>
    %41 = vector.extract_strided_slice %1 {offsets = [0, 0], sizes = [4, 2], strides = [1, 1]} : vector<4x128xf32> to vector<4x2xf32>
    %42 = tpu.concatenate %40, %41 in 1 : vector<4x126xf32>, vector<4x2xf32> -> vector<4x128xf32>
    %c126_i32 = arith.constant 126 : i32
    %43 = vector.broadcast %c126_i32 : i32 to vector<4x128xi32>
    %44 = arith.cmpi slt, %18, %43 : vector<4x128xi32>
    %cst_8 = arith.constant 0.000000e+00 : f32
    %45 = vector.broadcast %cst_8 : f32 to vector<4x128xf32>
    %46 = arith.select %44, %42, %45 : vector<4x128xi1>, vector<4x128xf32>
    %47 = vector.extract_strided_slice %1 {offsets = [0, 124], sizes = [4, 4], strides = [1, 1]} : vector<4x128xf32> to vector<4x4xf32>
    %48 = vector.extract_strided_slice %1 {offsets = [0, 0], sizes = [4, 124], strides = [1, 1]} : vector<4x128xf32> to vector<4x124xf32>
    %49 = tpu.concatenate %47, %48 in 1 : vector<4x4xf32>, vector<4x124xf32> -> vector<4x128xf32>
    %c4_i32 = arith.constant 4 : i32
    %50 = vector.broadcast %c4_i32 : i32 to vector<4x128xi32>
    %51 = arith.cmpi sge, %18, %50 : vector<4x128xi32>
    %cst_9 = arith.constant 0.000000e+00 : f32
    %52 = vector.broadcast %cst_9 : f32 to vector<4x128xf32>
    %53 = arith.select %51, %49, %52 : vector<4x128xi1>, vector<4x128xf32>
    %54 = vector.extract_strided_slice %1 {offsets = [0, 4], sizes = [4, 124], strides = [1, 1]} : vector<4x128xf32> to vector<4x124xf32>
    %55 = vector.extract_strided_slice %1 {offsets = [0, 0], sizes = [4, 4], strides = [1, 1]} : vector<4x128xf32> to vector<4x4xf32>
    %56 = tpu.concatenate %54, %55 in 1 : vector<4x124xf32>, vector<4x4xf32> -> vector<4x128xf32>
    %c124_i32 = arith.constant 124 : i32
    %57 = vector.broadcast %c124_i32 : i32 to vector<4x128xi32>
    %58 = arith.cmpi slt, %18, %57 : vector<4x128xi32>
    %cst_10 = arith.constant 0.000000e+00 : f32
    %59 = vector.broadcast %cst_10 : f32 to vector<4x128xf32>
    %60 = arith.select %58, %56, %59 : vector<4x128xi1>, vector<4x128xf32>
    %61 = vector.extract_strided_slice %1 {offsets = [0, 120], sizes = [4, 8], strides = [1, 1]} : vector<4x128xf32> to vector<4x8xf32>
    %62 = vector.extract_strided_slice %1 {offsets = [0, 0], sizes = [4, 120], strides = [1, 1]} : vector<4x128xf32> to vector<4x120xf32>
    %63 = tpu.concatenate %61, %62 in 1 : vector<4x8xf32>, vector<4x120xf32> -> vector<4x128xf32>
    %c8_i32 = arith.constant 8 : i32
    %64 = vector.broadcast %c8_i32 : i32 to vector<4x128xi32>
    %65 = arith.cmpi sge, %18, %64 : vector<4x128xi32>
    %cst_11 = arith.constant 0.000000e+00 : f32
    %66 = vector.broadcast %cst_11 : f32 to vector<4x128xf32>
    %67 = arith.select %65, %63, %66 : vector<4x128xi1>, vector<4x128xf32>
    %68 = vector.extract_strided_slice %1 {offsets = [0, 8], sizes = [4, 120], strides = [1, 1]} : vector<4x128xf32> to vector<4x120xf32>
    %69 = vector.extract_strided_slice %1 {offsets = [0, 0], sizes = [4, 8], strides = [1, 1]} : vector<4x128xf32> to vector<4x8xf32>
    %70 = tpu.concatenate %68, %69 in 1 : vector<4x120xf32>, vector<4x8xf32> -> vector<4x128xf32>
    %c120_i32 = arith.constant 120 : i32
    %71 = vector.broadcast %c120_i32 : i32 to vector<4x128xi32>
    %72 = arith.cmpi slt, %18, %71 : vector<4x128xi32>
    %cst_12 = arith.constant 0.000000e+00 : f32
    %73 = vector.broadcast %cst_12 : f32 to vector<4x128xf32>
    %74 = arith.select %72, %70, %73 : vector<4x128xi1>, vector<4x128xf32>
    %75 = tpu.concatenate %25, %1, %32, %39, %1, %46, %53, %1, %60, %67, %1, %74 in 0 : vector<4x128xf32>, vector<4x128xf32>, vector<4x128xf32>, vector<4x128xf32>, vector<4x128xf32>, vector<4x128xf32>, vector<4x128xf32>, vector<4x128xf32>, vector<4x128xf32>, vector<4x128xf32>, vector<4x128xf32>, vector<4x128xf32> -> vector<48x128xf32>
    %c0_13 = arith.constant 0 : index
    %c0_14 = arith.constant 0 : index
    %76 = vector.load %arg2[%c0_13, %c0_14] : memref<16x48xf32, #tpu.memory_space<vmem>>, vector<16x48xf32>
    %cst_15 = arith.constant dense<0.000000e+00> : vector<16x128xf32>
    %77 = tpu.matmul %76, %75, %cst_15 {dimension_numbers = #tpu.dot_dimension_numbers<[1], [0], [0], [1], [0, 0, 1, 1], [], []>} : vector<16x48xf32>, vector<48x128xf32>, vector<16x128xf32> -> vector<16x128xf32>
    %c0_16 = arith.constant 0 : index
    %c0_17 = arith.constant 0 : index
    %78 = vector.load %arg3[%c0_16, %c0_17] : memref<16x1xf32, #tpu.memory_space<vmem>>, vector<16x1xf32>
    %79 = vector.broadcast %78 : vector<16x1xf32> to vector<16x128xf32>
    %80 = arith.addf %77, %79 : vector<16x128xf32>
    %cst_18 = arith.constant 0.000000e+00 : f32
    %81 = vector.broadcast %cst_18 : f32 to vector<16x128xf32>
    %82 = arith.maximumf %80, %81 : vector<16x128xf32>
    %c0_19 = arith.constant 0 : index
    %c0_20 = arith.constant 0 : index
    %c0_21 = arith.constant 0 : index
    %83 = vector.load %arg4[%c0_19, %c0_20, %c0_21] : memref<1x16x128xf32, #tpu.memory_space<vmem>>, vector<1x16x128xf32>
    %84 = vector.shape_cast %83 : vector<1x16x128xf32> to vector<16x128xf32>
    %85 = vector.shape_cast %82 : vector<16x128xf32> to vector<1x16x128xf32>
    tpu.vector_store %arg4[%c0_19, %c0_20, %c0_21], %85 {strides = array<i32>} : memref<1x16x128xf32, #tpu.memory_space<vmem>>, vector<1x16x128xf32>,
    return
  }
  func.func @transform_0(%arg0: i32) -> (i32, i32, i32) {
    %c0_i32 = arith.constant 0 : i32
    %c0_i32_0 = arith.constant 0 : i32
    %c0_i32_1 = arith.constant 0 : i32
    return %arg0, %c0_i32, %c0_i32_0 : i32, i32, i32
  }
  func.func @transform_1(%arg0: i32) -> (i32, i32) {
    %c0_i32 = arith.constant 0 : i32
    %c0_i32_0 = arith.constant 0 : i32
    %c0_i32_1 = arith.constant 0 : i32
    return %c0_i32, %c0_i32_0 : i32, i32
  }
  func.func @transform_2(%arg0: i32) -> (i32, i32) {
    %c0_i32 = arith.constant 0 : i32
    %c0_i32_0 = arith.constant 0 : i32
    %c0_i32_1 = arith.constant 0 : i32
    return %c0_i32, %c0_i32_0 : i32, i32
  }
  func.func @transform_3(%arg0: i32) -> (i32, i32, i32) {
    %c0_i32 = arith.constant 0 : i32
    %c0_i32_0 = arith.constant 0 : i32
    %c0_i32_1 = arith.constant 0 : i32
    return %arg0, %c0_i32, %c0_i32_0 : i32, i32, i32
  }
}

</mosaic_0001>

<bundles_post_ra>
// kernel: tpu_custom_call.1
= control target key start
LH: loop header
LB: loop body
LE: loop exit
PB: predicated region body
PF: predicated region fallthrough
CT: control target
= control target key end

     0   :  { %8 = vsyncpa [#allocation3], 0  ;;  %s771_s0 = inlined_call_operand.hbm [shape: f32[2,4,128], index: 0, kind: input, shape index: {}]   ;;  %s772_s1 = inlined_call_operand.vmem [shape: f32[16,48], index: 1, kind: input, shape index: {}]   ;;  %s773_s2 = inlined_call_operand.vmem [shape: f32[16,1], index: 2, kind: input, shape index: {}]   ;;  %s774_s3 = inlined_call_operand.hbm [shape: f32[2,16,128], index: 3, kind: output, shape index: {}]  }
   0x1   :  { %10 = vsyncpa [#allocation3 + $0x1], 0 }
   0x2   :  { %11 = vsyncpa [#allocation4], 0 }
   0x3   :  { %13 = vsyncpa [#allocation4 + $0x1], 0  ;;  %s610_s12 = smov 0   ;;  %s612_s13 = smov 0  }
   0x4   :  { %s614_s14 = smov 0   ;;  %s616_s15 = smov 0  }
   0x5 LB: > { %s631_s16 = sadd.s32 4294967295, %s578_s15   ;;  %s402_s17 = sadd.s32 4294967294, %s578_s15   ;;  %s578_s15 = sphi %s616_s15, %s784_s15   ;;  %s574_s14 = sphi %s614_s14, %s783_s14   ;;  %s570_s13 = sphi %s612_s13, %s782_s13   ;;  %s566_s12 = sphi %s610_s12, %s781_s12  }
   0x6   : > { %s635_s18 = sadd.s32 1, %s578_s15   ;;  %s26_s19 = sadd.s32 1, %s574_s14 }
   0x7   : > { %s23_s20 = ssub.s32 %s578_s15, %s635_s18  ;;  %p33_p0 = scmp.ne.s32.totalorder %s574_s14, %s570_s13 }
   0x8   : > { %p24_p1 = scmp.eq.s32.totalorder %s23_s20, 0  ;;  %p34_p2 = scmp.eq.s32.totalorder %s578_s15, 0 }
   0x9   : > { %p39_p3 = scmp.ne.s32.totalorder %s570_s13, %s566_s12  ;;  %p40_p4 = scmp.eq.s32.totalorder %s631_s16, 0 }
   0xa   : > { %s647_s21 = scalar_select %p24_p1, %s574_s14, %s26_s19  }
   0xb   : > { %p649_p5 = por %p34_p2, %p33_p0  ;;  %p653_p6 = por %p40_p4, %p39_p3 }
   0xc   : > { %p105_p7 = scmp.eq.s32.totalorder %s631_s16, 1  ;;  %p111_p8 = scmp.eq.s32.totalorder %s402_s17, 1 }
   0xd   : > { %p436_p10 = scmp.lt.s32.totalorder %s578_s15, 2  ;;  %s137_s26 = sand.u32 1, %s574_s14  }
   0xe   : > { %p660_p11 = por %p105_p7, %p33_p0  ;;  %p664_p12 = por %p111_p8, %p39_p3 }
   0xf   : > { %s406_s27 = sshll.u32 %s578_s15, 2  ;;  %s405_s28 = sshll.u32 %s137_s26, 2 }
  0x10   : > { %s145_s4 = scalar_lea.hbm %s771_s0, %s406_s27  ;;  %s141_s6 = scalar_lea.vmem [#allocation2], %s405_s28 }
  0x11   : > { %s147_s5 = sshll.u32 %s145_s4, 4  ;;  %s149_s7 = sshll.u32 %s141_s6, 4  ;;  %s148_s5 = int_to_ptr.hbm [resolvable:$true] %s147_s5  ;;  %s150_s7 = int_to_ptr.vmem [resolvable:$true] %s149_s7 }
  0x12   : > { %p675_p13 = pnand %p436_p10, %p649_p5  ;;  %p407_p0 = scmp.ge.s32.totalorder %s578_s15, 1 }
  0x13   : > { %p154_p1 = scmp.lt.s32.totalorder %s578_s15, 3  ;;  %s138_s9 = scalar_lea.sflag [#allocation3], %s137_s26 }
  0x14   : > { %s482_s10 = sshra.s32 %s148_s5, 4  ;;  %p486_p3 = pneg %p675_p13  ;;  %s483_s10 = int_to_ptr.hbm [resolvable:$true] %s482_s10 }
  0x15   : > { %s484_s11 = scalar_lea.hbm %s483_s10, 4  ;;  %s489_s20 = scalar_lea.hbm %s771_s0, 8 }
  0x16   : > { %p485_p2 = scmp.ne.s32.totalorder %s483_s10, %s484_s11  ;;  %p490_p5 = scmp.lt.s32.totalorder %s483_s10, %s771_s0 }
  0x17   : > { %p491_p8 = scmp.lt.s32.totalorder %s489_s20, %s484_s11 }
  0x18   : > { %p487_p4 = pnand %p486_p3, %p485_p2 }
  0x19   : > { %p492_p10 = por %p491_p8, %p490_p5 }
  0x1a   : > { %p488_p7 = pneg %p487_p4 }
  0x1c   : > { %p493_p9 = pnand %p492_p10, %p488_p7 }
  0x1e   : > { %496 = shalt.err (!%p493_p9)
}
  0x1f   : > { %431 = dma.hbm_to_vmem [thread:$0]  (!%p675_p13), %s148_s5, 64, %s150_s7, %s138_s9  }
  0x20   : > { %p155_p2 = pnand %p407_p0, %p154_p1 }
  0x21   : > { %s696_s26 = sand.u32 (!%p155_p2), 1, %s570_s13  }
  0x22   : > { %158 = sbr.rel (%p155_p2) target bundleno = 312 (0x138), region = 32  ;;  %s408_s28 = sshll.u32 (!%p155_p2), %s696_s26, 2 }
  0x23   : > { %s161_s29 = scalar_lea.sflag (!%p155_p2), [#allocation3], %s696_s26  ;;  %s164_s30 = scalar_lea.vmem (!%p155_p2), [#allocation2], %s408_s28 }
  0x27   : > { %557 = dma.done.wait (%p653_p6), %s161_s29, 64  }
  0x28   : > { %559 = vsyncadd (%p653_p6), %s161_s29, 4294967232  ;;  %v704_v0 = vld [vmem:[%s164_s30] sm:$0xf]  ;;  %s580_s4 = smov 120   ;;  %s581_s5 = smov 124   ;;  %v189_v1 = vlaneseq  ;;  %v268_v2 = vld [vmem:[%s773_s2 + $0x8] sm:$0xff] }
  0x29   : > { %239 = vrot.lane.b32.xlu0 %v704_v0, %s580_s4  ;;  %229 = vrot.lane.b32.xlu1 %v704_v0, %s581_s5  ;;  %s582_s6 = smov 4   ;;  %s583_s7 = smov 8   ;;  %v267_v3 = vld [vmem:[%s773_s2] sm:$0xff]  ;;  %v588_v4 = vmov 0   ;;  %vm258_vm1 = vcmask 1043456   ;;  %v244_v18 = vrot.slane %v704_v0, 4 }
  0x2a   : > { %224 = vrot.lane.b32.xlu2 %v704_v0, %s582_s6  ;;  %s584_s8 = smov 126   ;;  %s585_s23 = smov 2   ;;  %481 = vset.pattern.permute.xlu0 %v588_v4  ;;  %v190_v5 = vand.u32 127, %v189_v1  ;;  %v265_v33 = vld [vmem:[%s772_s1] sm:$0xff]  ;;  %vm279_vm9 = vcmask 392192   ;;  %v266_v34 = vld [vmem:[%s772_s1 + $0x8] sm:$0xff] }
  0x2b   : > { %s586_s9 = smov 127   ;;  %s587_s10 = smov 1   ;;  %480 = vset.pattern.permute.xlu2 %v588_v4 }
  0x2c   : > { %vm242_vm0 = vcmp.lt.s32.totalorder %v190_v5, 120  ;;  %vm237_vm2 = vcmp.ge.s32.totalorder %v190_v5, 8  ;;  %vm222_vm3 = vcmp.lt.s32.totalorder %v190_v5, 126  ;;  %vm232_vm4 = vcmp.lt.s32.totalorder %v190_v5, 124  ;;  %s409_s30 = sshll.u32 %s696_s26, 4  ;;  %s417_s4 = sshll.u32 %s631_s16, 4 }
  0x2d   : > { %vm227_vm5 = vcmp.ge.s32.totalorder %v190_v5, 4  ;;  %vm217_vm6 = vcmp.ge.s32.totalorder %v190_v5, 2  ;;  %vm212_vm7 = vcmp.lt.s32.totalorder %v190_v5, 127  ;;  %vm207_vm8 = vcmp.ge.s32.totalorder %v190_v5, 1  ;;  %s314_s16 = scalar_lea.sflag [#allocation4], %s696_s26  ;;  %s532_s22 = scalar_lea.hbm %s774_s3, 32 }
  0x31   : > { %234 = vrot.lane.b32.xlu0 %v704_v0, %s583_s7  ;;  %219 = vrot.lane.b32.xlu1 %v704_v0, %s584_s8  ;;  %s325_s8 = scalar_lea.hbm %s774_s3, %s417_s4 }
  0x32   : > { %214 = vrot.lane.b32.xlu2 %v704_v0, %s585_s23  ;;  %s187_s23 = scalar_lea.vmem [#allocation5], %s409_s30 }
  0x39   : > { %209 = vrot.lane.b32.xlu0 %v704_v0, %s586_s9  ;;  %204 = vrot.lane.b32.xlu1 %v704_v0, %s587_s10  ;;  %s326_s9 = sshll.u32 %s187_s23, 4  ;;  %s328_s10 = sshll.u32 %s325_s8, 4  ;;  %s327_s9 = int_to_ptr.vmem [resolvable:$true] %s326_s9  ;;  %s329_s10 = int_to_ptr.hbm [resolvable:$true] %s328_s10 }
  0x3a   : > { %271 = vperm.xlu2 %480, %v267_v3   ;;  %s526_s11 = sshra.s32 %s329_s10, 4  ;;  %s527_s11 = int_to_ptr.hbm [resolvable:$true] %s526_s11 }
  0x3b   : > { %s528_s17 = scalar_lea.hbm %s527_s11, 16  ;;  %p533_p0 = scmp.lt.s32.totalorder %s527_s11, %s774_s3 }
  0x3c   : > { %p529_p6 = scmp.ne.s32.totalorder %s527_s11, %s528_s17  ;;  %p534_p1 = scmp.lt.s32.totalorder %s532_s22, %s528_s17 }
  0x3e   : > { %p530_p9 = pnand %p529_p6, %p660_p11  ;;  %p535_p3 = por %p534_p1, %p533_p0 }
  0x40   : > { %p531_p13 = pneg %p530_p9 }
  0x41   : > { %276 = vperm.xlu0 %481, %v268_v2  }
  0x42   : > { %p536_p4 = pnand %p535_p3, %p531_p13 }
  0x84   : > { %v225_v6 = vpop.permute.xlu2 %224 }
  0x85   : > { %v228_v20 = vsel %vm227_vm5, %v225_v6, 0.0 }
  0x86   : > { %v262_v25 = vsel %vm258_vm1, %v228_v20, %v244_v18 }
  0x8c   : > { %v215_v12 = vpop.permute.xlu2 %214 }
  0x8d   : > { %v218_v21 = vsel %vm217_vm6, %v215_v12, 0.0 }
  0x8e   : > { %v247_v24 = vrot.slane %v218_v21, 4 }
  0x94   : > { %v272_v35 = vpop.permute.xlu2 %271 }
  0x9b   : > { %v240_v7 = vpop.permute.xlu0 %239  ;;  %v230_v8 = vpop.permute.xlu1 %229 }
  0x9c   : > { %v243_v9 = vsel %vm242_vm0, %v240_v7, 0.0  ;;  %v233_v19 = vsel %vm232_vm4, %v230_v8, 0.0 }
  0x9d   : > { %v256_v10 = vrot.slane %v243_v9, 4 }
  0x9f   : > { %v264_v11 = vsel %vm258_vm1, %v704_v0, %v256_v10 }
  0xa0   : > { %296 = vmatpush.msra.mxu0 %v264_v11  ;;  %418 = vmatpush.msra.mxu1 %v264_v11 }
  0xa3   : > { %v235_v13 = vpop.permute.xlu0 %234  ;;  %v220_v14 = vpop.permute.xlu1 %219 }
  0xa4   : > { %v238_v15 = vsel %vm237_vm2, %v235_v13, 0.0  ;;  %v223_v16 = vsel %vm222_vm3, %v220_v14, 0.0 }
  0xa5   : > { %v253_v17 = vrot.slane %v238_v15, 4  ;;  %v250_v22 = vrot.slane %v223_v16, 4 }
  0xa7   : > { %v263_v23 = vsel %vm258_vm1, %v233_v19, %v253_v17  ;;  %v261_v27 = vsel %vm258_vm1, %v704_v0, %v250_v22 }
  0xa8   : > { %297 = vmatpush.msra.mxu0 %v263_v23  ;;  %419 = vmatpush.msra.mxu1 %v263_v23 }
  0xaa   : > { %298 = vmatpush.msra.mxu0 %v262_v25  ;;  %420 = vmatpush.msra.mxu1 %v262_v25 }
  0xab   : > { %v210_v26 = vpop.permute.xlu0 %209  ;;  %v205_v28 = vpop.permute.xlu1 %204 }
  0xac   : > { %v213_v29 = vsel %vm212_vm7, %v210_v26, 0.0  ;;  %299 = vmatpush.msra.mxu0 %v261_v27  ;;  %421 = vmatpush.msra.mxu1 %v261_v27  ;;  %v208_v30 = vsel %vm207_vm8, %v205_v28, 0.0 }
  0xad   : > { %v260_v31 = vsel %vm258_vm1, %v213_v29, %v247_v24  ;;  %v259_v32 = vsel %vm258_vm1, %v208_v30, %v244_v18 }
  0xae   : > { %300 = vmatpush.msra.mxu0 %v260_v31  ;;  %422 = vmatpush.msra.mxu1 %v260_v31 }
  0xb0   : > { %301 = vmatpush.msra.mxu0 %v259_v32  ;;  %423 = vmatpush.msra.mxu1 %v259_v32 }
  0xb1   : > { %410 = vmatmul.msk.f32.vlgmr.msra.gmra.mxu0 %vm279_vm9, %v265_v33  ;;  %411 = vmatmul.msk.f32.vlgmr.msra.gmra.mxu1 %vm279_vm9, %v266_v34 }
  0xb3   : > { %v277_v36 = vpop.permute.xlu0 %276 }
 0x12e   : > { %v303_v37 = vpop.f32.mrf.mxu0  ;;  %v306_v38 = vpop.f32.mrf.mxu1 }
 0x12f   : > { %v304_v39 = vadd.f32 %v303_v37, %v272_v35  ;;  %v307_v40 = vadd.f32 %v306_v38, %v277_v36 }
 0x131   : > { %v309_v41 = vmax.f32 %v304_v39, 0.0  ;;  %v310_v42 = vmax.f32 %v307_v40, 0.0 }
 0x133   : > { %311 = vst [vmem:[%s187_s23] sm:$0xff] %v309_v41 }
 0x134   : > { %312 = vst [vmem:[%s187_s23 + $0x8] sm:$0xff] %v310_v42 }
 0x135   : > { %539 = shalt.err (!%p536_p4)
}
 0x136   : > { %s589_s26 = smov 128  }
 0x137   : > { %426 = dma.vmem_to_hbm [thread:$0]  (%p660_p11), %s327_s9, 256, %s329_s10, %s314_s16, %s589_s26, %s589_s26, %s583_s7  }
 0x138 PF: > { %s343_s29 = sand.u32 1, %s566_s12   ;;  %p780_p7 = scmp.ge.s32.totalorder %s578_s15, 2 }
 0x139   : > { %s344_s30 = scalar_lea.sflag [#allocation4], %s343_s29 }
 0x13a   : > { %p433_p5 = pnand %p780_p7, %p664_p12 }
 0x13c   : > { %p434_p8 = pneg %p433_p5 }
 0x13e   : > { %561 = dma.done.wait (%p434_p8), %s344_s30, 256  }
 0x13f   : > { %563 = vsyncadd (%p434_p8), %s344_s30, 4294967040  ;;  %p16_p10 = scmp.ge.s32.totalorder %s635_s18, 4   ;;  %s781_s12 = smov %s570_s13 }
 0x140   : > { %s782_s13 = smov %s574_s14  ;;  %s783_s14 = smov %s647_s21 }
 0x141   : > { %s784_s15 = smov %s635_s18  ;;  %18 = sbr.rel (!%p16_p10) target bundleno = 5 (0x5), region = 77 }
 0x146   :  { %350 = vsyncpa [#allocation3], 1 }
 0x147   :  { %352 = vsyncpa [#allocation3 + $0x1], 1 }
 0x148   :  { %353 = vsyncpa [#allocation4], 1 }
 0x149   :  { %355 = vsyncpa [#allocation4 + $0x1], 1 }

</bundles_post_ra>
